<compile_context>
chip_gen: v7x
topology: tpu7x:2x2x1
jax: 0.10.0
libtpu: 0.0.40
codegen_flags: <defaults>
</compile_context>

<pallas_src>
import functools

import jax
import jax.numpy as jnp
from jax import lax
from jax.experimental import pallas as pl
from jax.experimental.pallas import tpu as pltpu


# ----------------------------- projection: XW = X @ W_a ----------------------

def _proj_kernel(x_ref, w_ref, o_ref):
    # f32 operands -> full-precision MXU matmul (Pallas does not demote to bf16).
    o_ref[...] = jnp.dot(x_ref[...], w_ref[...],
                         preferred_element_type=jnp.float32)


def _row_tile(m, cap=1024):
    if m <= cap:
        return m
    for t in range(cap, 7, -8):
        if m % t == 0:
            return t
    return m


def _project_rows(x2d, w):
    m, f = x2d.shape
    fo = w.shape[1]
    tm = _row_tile(m)
    return pl.pallas_call(
        _proj_kernel,
        out_shape=jax.ShapeDtypeStruct((m, fo), jnp.float32),
        grid_spec=pltpu.PrefetchScalarGridSpec(
            num_scalar_prefetch=0,
            grid=(m // tm,),
            in_specs=[
                pl.BlockSpec((tm, f), lambda i: (i, 0)),   # row tile of X
                pl.BlockSpec((f, fo), lambda i: (0, 0)),   # W_a (shared)
            ],
            out_specs=pl.BlockSpec((tm, fo), lambda i: (i, 0)),
        ),
        compiler_params=pltpu.CompilerParams(
            dimension_semantics=("parallel",)),
    )(x2d, w)


# ----------------------------- attention kernel ------------------------------

def _attn_kernel(x_ref, xw_ref, adj_ref, b_ref, o_ref, *, mxu_dtype):
    x = x_ref[...]                      # [BB, N, F]
    xw = xw_ref[...]                    # [BB, N, F]
    adj = adj_ref[...]                  # [BB, N, N]
    bias = b_ref[...]                   # [1, F]

    lhs = xw if mxu_dtype is None else xw.astype(mxu_dtype)
    rhs = x if mxu_dtype is None else x.astype(mxu_dtype)

    # e[b] = (X W_a)[b] @ X[b]^T, contraction expressed directly so no explicit
    # transpose / VMEM relayout of X is materialized.
    e = lax.dot_general(
        lhs, rhs,
        dimension_numbers=(((2,), (2,)), ((0,), (0,))),
        preferred_element_type=jnp.float32)             # [BB, N, N]

    # LeakyReLU(negative_slope=0.1) fused with the adjacency mask
    # (single mask vreg reused for the select).
    mask = adj > 0
    att = jnp.where(mask,
                    jnp.where(e > 0, e, jnp.float32(0.1) * e),
                    jnp.float32(-9.0e15))

    # Row softmax. The normalizer is tiny ([BB, N, 1]); use an exact
    # reciprocal and fold the multiply into the [BB, N, F] epilogue.
    m = jnp.max(att, axis=-1, keepdims=True)
    p = jnp.exp(att - m)
    s = jnp.sum(p, axis=-1, keepdims=True)
    inv_s = jnp.float32(1.0) / s

    pv = p if mxu_dtype is None else p.astype(mxu_dtype)
    hp = lax.dot_general(
        pv, rhs,
        dimension_numbers=(((2,), (1,)), ((0,), (0,))),
        preferred_element_type=jnp.float32)             # [BB, N, F]
    hp = hp * inv_s + bias

    # ELU (alpha=1): exp only on the clamped-negative branch (avoids inf /
    # wasted transcendental work on positives).
    neg = jnp.exp(jnp.minimum(hp, 0.0)) - 1.0
    o_ref[...] = jnp.where(hp > 0, hp, neg).astype(o_ref.dtype)


# ----------------------------- wrapper ---------------------------------------

def _choose_block_b(batch, n, f, vmem_budget_bytes=8 * 1024 * 1024):
    # f32 bytes per batch live per grid step (x, xw, out, adj), double-buffered
    # by the BlockSpec pipeline.
    per_b = 4 * (3 * n * f + n * n) * 2
    bb = max(1, min(batch, vmem_budget_bytes // max(per_b, 1)))
    # Keep at least two grid steps when possible so both v7x TensorCores get
    # work under dimension_semantics=("parallel",); harmless on v5e/v6e.
    if bb >= batch and batch > 1:
        bb = (batch + 1) // 2
    while batch % bb:
        bb -= 1
    return bb


def gat_layer_sim(x, adj, w_a, bias, *, block_b=None, mxu_dtype=None):
    """x: [B,N,F] f32, adj: [B,N,N], w_a: [F,F], bias: [1,F] -> [B,N,F] f32.

    mxu_dtype: optionally jnp.bfloat16 to feed the MXU with bf16 operands
    (f32 accumulation) on v6e/v7x; default None keeps full f32 semantics.
    """
    B, N, F = x.shape
    assert adj.shape == (B, N, N)
    assert w_a.shape == (F, F)
    assert bias.shape == (1, F)

    # Projection hoisted out of the per-batch grid: one [B*N,F] @ [F,F] matmul.
    xw = _project_rows(x.reshape(B * N, F), w_a).reshape(B, N, F)

    bb = block_b if block_b is not None else _choose_block_b(B, N, F)
    assert B % bb == 0

    # Raise the scoped-VMEM limit only when the blocks actually need it
    # (defaults: 16 MiB v5e, 32 MiB v6e/v7x).
    est_bytes = 4 * bb * (3 * N * F + 2 * N * N + N * F) * 2
    vmem_limit = None
    if est_bytes > 16 * 1024 * 1024:
        vmem_limit = min(2 * est_bytes, 100 * 1024 * 1024)
    # TODO(synk): for N beyond ~1-2k nodes, tile the key axis with an online
    # (flash-style) softmax so the [N,N] tile stays bounded in VMEM (v7x has
    # only 64 MiB physical VMEM).

    kernel = functools.partial(_attn_kernel, mxu_dtype=mxu_dtype)
    return pl.pallas_call(
        kernel,
        out_shape=jax.ShapeDtypeStruct((B, N, F), jnp.float32),
        grid_spec=pltpu.PrefetchScalarGridSpec(
            num_scalar_prefetch=0,
            grid=(B // bb,),
            in_specs=[
                pl.BlockSpec((bb, N, F), lambda b: (b, 0, 0)),   # X
                pl.BlockSpec((bb, N, F), lambda b: (b, 0, 0)),   # X @ W_a
                pl.BlockSpec((bb, N, N), lambda b: (b, 0, 0)),   # adj
                pl.BlockSpec((1, F), lambda b: (0, 0)),          # bias (shared)
            ],
            out_specs=pl.BlockSpec((bb, N, F), lambda b: (b, 0, 0)),
        ),
        compiler_params=pltpu.CompilerParams(
            dimension_semantics=("parallel",),
            vmem_limit_bytes=vmem_limit,
        ),
    )(x, xw, adj, bias)


# ----------------------------- reference & test ------------------------------

def _reference(x, adj, w_a, bias):
    """Pure-JAX reference reproducing the PyTorch forward.

    Matmuls are pinned to Precision.HIGHEST so the reference runs at true f32
    like the kernel (XLA's default TPU matmul precision truncates f32 inputs
    to bf16, which the softmax amplifies well past any sane tolerance).
    """
    hi = jax.lax.Precision.HIGHEST
    xw = jnp.einsum("bnf,fg->bng", x, w_a, precision=hi)
    e = jnp.einsum("bnf,bmf->bnm", xw, x, precision=hi)
    e = jnp.where(e > 0, e, 0.1 * e)                     # LeakyReLU(0.1)
    att = jnp.where(adj > 0, e, -9.0e15)
    att = jax.nn.softmax(att, axis=2)
    hp = jnp.einsum("bnm,bmf->bnf", att, x, precision=hi) + bias
    return jnp.where(hp > 0, hp, jnp.expm1(jnp.minimum(hp, 0.0)))   # ELU


def _xavier_uniform(key, shape, gain=1.414):
    fan_in, fan_out = shape[0], shape[1]
    a = gain * jnp.sqrt(6.0 / (fan_in + fan_out))
    return jax.random.uniform(key, shape, jnp.float32, minval=-a, maxval=a)


if __name__ == "__main__":
    key = jax.random.PRNGKey(0)
    kx, kadj, kw, kb = jax.random.split(key, 4)

    B, N, F = 2, 8, 32  # batch, nodes, features (in_features == out_features)

    x = jax.random.normal(kx, (B, N, F), jnp.float32)
    # random sparse-ish adjacency with self loops
    adj = (jax.random.uniform(kadj, (B, N, N)) > 0.4).astype(jnp.float32)
    adj = jnp.maximum(adj, jnp.eye(N, dtype=jnp.float32)[None])

    w_a = _xavier_uniform(kw, (F, F))
    bias = _xavier_uniform(kb, (1, F))

    out = gat_layer_sim(x, adj, w_a, bias)
    out = jax.block_until_ready(out)

    ref = _reference(x, adj, w_a, bias)
    assert out.shape == (B, N, F)
    err = jnp.max(jnp.abs(out - ref))
    assert jnp.allclose(out, ref, atol=2e-3, rtol=2e-3), (
        f"mismatch vs reference, max_abs_err={float(err):.3e}")

    print("KERNEL_OK")
</pallas_src>

<mosaic_0001>
module attributes {stable_mosaic.version = 11 : i64} {
  func.func @_proj_kernel(%arg0: i32, %arg1: memref<16x32xf32, #tpu.memory_space<vmem>>, %arg2: memref<32x32xf32, #tpu.memory_space<vmem>>, %arg3: memref<16x32xf32, #tpu.memory_space<vmem>>) attributes {dimension_semantics = [#tpu.dimension_semantics<parallel>], iteration_bounds = array<i64: 1>, scalar_prefetch = 0 : i64, scratch_operands = 0 : i64, tpu.core_type = #tpu.core_type<tc>, window_params = [{transform_indices = @transform_0, window_bounds = array<i64: 16, 32>}, {pipeline_mode = #tpu.pipeline_mode<synchronous>, transform_indices = @transform_1, window_bounds = array<i64: 32, 32>}, {transform_indices = @transform_2, window_bounds = array<i64: 16, 32>}]} {
    %c0 = arith.constant 0 : index
    %c0_0 = arith.constant 0 : index
    %0 = vector.load %arg1[%c0, %c0_0] : memref<16x32xf32, #tpu.memory_space<vmem>>, vector<16x32xf32>
    %c0_1 = arith.constant 0 : index
    %c0_2 = arith.constant 0 : index
    %1 = vector.load %arg2[%c0_1, %c0_2] : memref<32x32xf32, #tpu.memory_space<vmem>>, vector<32x32xf32>
    %cst = arith.constant dense<0.000000e+00> : vector<16x32xf32>
    %2 = tpu.matmul %0, %1, %cst {dimension_numbers = #tpu.dot_dimension_numbers<[1], [0], [0], [1], [0, 0, 1, 1], [], []>} : vector<16x32xf32>, vector<32x32xf32>, vector<16x32xf32> -> vector<16x32xf32>
    %c0_3 = arith.constant 0 : index
    %c0_4 = arith.constant 0 : index
    %3 = vector.load %arg3[%c0_3, %c0_4] : memref<16x32xf32, #tpu.memory_space<vmem>>, vector<16x32xf32>
    tpu.vector_store %arg3[%c0_3, %c0_4], %2 {strides = array<i32>} : memref<16x32xf32, #tpu.memory_space<vmem>>, vector<16x32xf32>,
    return
  }
  func.func @transform_0(%arg0: i32) -> (i32, i32) {
    %c0_i32 = arith.constant 0 : i32
    %c0_i32_0 = arith.constant 0 : i32
    return %arg0, %c0_i32 : i32, i32
  }
  func.func @transform_1(%arg0: i32) -> (i32, i32) {
    %c0_i32 = arith.constant 0 : i32
    %c0_i32_0 = arith.constant 0 : i32
    %c0_i32_1 = arith.constant 0 : i32
    return %c0_i32, %c0_i32_0 : i32, i32
  }
  func.func @transform_2(%arg0: i32) -> (i32, i32) {
    %c0_i32 = arith.constant 0 : i32
    %c0_i32_0 = arith.constant 0 : i32
    return %arg0, %c0_i32 : i32, i32
  }
}

</mosaic_0001>

<bundles_post_ra>
// kernel: tpu_custom_call.1
= control target key start
LH: loop header
LB: loop body
LE: loop exit
PB: predicated region body
PF: predicated region fallthrough
CT: control target
= control target key end

     0   :  { %7 = vsyncpa [#allocation3], 0  ;;  %s321_s0 = inlined_call_operand.hbm [shape: f32[16,32], index: 0, kind: input, shape index: {}]   ;;  %s322_s1 = inlined_call_operand.hbm [shape: f32[32,32], index: 1, kind: input, shape index: {}]   ;;  %s323_s2 = inlined_call_operand.hbm [shape: f32[16,32], index: 2, kind: output, shape index: {}]  }
   0x1   :  { %8 = vsyncpa [#allocation6], 0 }
   0x2   :  { %9 = vsyncpa [#allocation4], 0  ;;  %s252_s9 = smov [#allocation2]   ;;  %s180_s13 = scalar_lea.hbm %s321_s0, 256 }
   0x3   :  { %s15_s10 = sshll.u32 %s252_s9, 4  ;;  %p181_p0 = scmp.ne.s32.totalorder %s321_s0, %s180_s13  ;;  %s16_s10 = int_to_ptr.vmem [resolvable:$true] %s15_s10 }
   0x4   :  { %p184_p1 = scmp.lt.u32.totalorder %s180_s13, %s321_s0 }
   0x6   :  { %p186_p2 = pnand %p184_p1, %p181_p0 }
   0x8   :  { %189 = shalt.err (!%p186_p2)
}
   0x9   :  { %s190_s18 = scalar_lea.vmem %s16_s10, 256  ;;  %p195_p4 = scmp.lt.s32.totalorder %s16_s10, %s16_s10 }
   0xa   :  { %p191_p3 = scmp.ne.s32.totalorder %s16_s10, %s190_s18  ;;  %p196_p5 = scmp.lt.s32.totalorder %s190_s18, %s190_s18 }
   0xc   :  { %p197_p6 = por %p196_p5, %p195_p4 }
   0xe   :  { %p198_p7 = pnand %p197_p6, %p191_p3 }
  0x10   :  { %201 = shalt.err (!%p198_p7)
}
  0x11   :  { %s253_s19 = smov 128   ;;  %s254_s20 = smov 8  }
  0x12   :  { %21 = dma.hbm_to_vmem [thread:$0]  %s321_s0, 256, %s16_s10, [#allocation3], %s253_s19, %s253_s19, %s254_s20  }
  0x13   :  { %s255_s23 = smov [#allocation5]   ;;  %s202_s27 = scalar_lea.hbm %s322_s1, 512 }
  0x14   :  { %s27_s24 = sshll.u32 %s255_s23, 4  ;;  %p203_p8 = scmp.ne.s32.totalorder %s322_s1, %s202_s27  ;;  %s28_s24 = int_to_ptr.vmem [resolvable:$true] %s27_s24 }
  0x15   :  { %p206_p9 = scmp.lt.u32.totalorder %s202_s27, %s322_s1 }
  0x17   :  { %p208_p10 = pnand %p206_p9, %p203_p8 }
  0x19   :  { %211 = shalt.err (!%p208_p10)
}
  0x1a   :  { %s212_s4 = scalar_lea.vmem %s28_s24, 512  ;;  %p217_p12 = scmp.lt.s32.totalorder %s28_s24, %s28_s24 }
  0x1b   :  { %p213_p11 = scmp.ne.s32.totalorder %s28_s24, %s212_s4  ;;  %p218_p13 = scmp.lt.s32.totalorder %s212_s4, %s212_s4 }
  0x1d   :  { %p219_p0 = por %p218_p13, %p217_p12 }
  0x1f   :  { %p220_p1 = pnand %p219_p0, %p213_p11 }
  0x21   :  { %223 = shalt.err (!%p220_p1)
}
  0x22   :  { %33 = dma.hbm_to_vmem [thread:$0]  %s322_s1, 512, %s28_s24, [#allocation6], %s253_s19, %s253_s19, %s254_s20  }
  0x23   :  { %246 = dma.done.wait [#allocation3], 256  }
  0x24   :  { %247 = vsyncadd [#allocation3], 4294967040 }
  0x25   :  { %248 = dma.done.wait [#allocation6], 512  }
  0x26   :  { %249 = vsyncadd [#allocation6], 4294966784  ;;  %vm46_vm0 = vcmask 261120   ;;  %v42_v0 = vld [vmem:[#allocation5] sm:$0xff]  ;;  %v43_v1 = vld [vmem:[#allocation5 + $0x8] sm:$0xff]  ;;  %s256_s1 = smov [#allocation7]  }
  0x27   :  { %v44_v2 = vld [vmem:[#allocation5 + $0x10] sm:$0xff]  ;;  %v167_v3 = vpack.c.bf16 %v43_v1, %v42_v0  ;;  %v45_v4 = vld [vmem:[#allocation5 + $0x18] sm:$0xff]  ;;  %s135_s6 = sshll.u32 %s256_s1, 4  ;;  %s136_s6 = int_to_ptr.vmem [resolvable:$true] %s135_s6 }
  0x28   :  { %v40_v5 = vld [vmem:[#allocation2] sm:$0xff]  ;;  %v171_v6 = vpack.c.bf16 %v45_v4, %v44_v2  ;;  %v41_v7 = vld [vmem:[#allocation2 + $0x8] sm:$0xff]  ;;  %s224_s7 = scalar_lea.vmem %s136_s6, 256  ;;  %p229_p3 = scmp.lt.s32.totalorder %s136_s6, %s136_s6 }
  0x29   :  { %164 = vmatprep.mubr.msk.f32.mxu0 %vm46_vm0, %v40_v5  ;;  %168 = vmatprep.subr.bf16.mxu0 %v167_v3  ;;  %p225_p2 = scmp.ne.s32.totalorder %s136_s6, %s224_s7  ;;  %p230_p4 = scmp.lt.s32.totalorder %s224_s7, %s224_s7 }
  0x2a   :  { %170 = vmatpush3.bf16.msra.mxu0 %v167_v3 }
  0x2b   :  { %172 = vmatprep.subr.bf16.mxu0 %v171_v6  ;;  %p231_p5 = por %p230_p4, %p229_p3 }
  0x2d   :  { %p232_p6 = pnand %p231_p5, %p225_p2 }
  0x2e   :  { %174 = vmatpush3.bf16.msra.mxu0 %v171_v6 }
  0x31   :  { %165 = vmatmul.mubr.msk.f32.vlgmr.msra.gmra.mrb[0].mxu0 %vm46_vm0, %v41_v7 }
 0x104   :  { %v166_v8 = vpop.f32.mrb[0].mxu0 }
 0x105   :  { %129 = vst.msk [vmem:[#allocation7 + $0x8] sm:$0xff] %vm46_vm0, %v166_v8  ;;  %v119_v9 = vpop.f32.mrb[1].mxu0 }
 0x106   :  { %128 = vst.msk [vmem:[#allocation7] sm:$0xff] %vm46_vm0, %v119_v9 }
 0x107   :  { %235 = shalt.err (!%p232_p6)
}
 0x108   :  { %s236_s10 = scalar_lea.hbm %s323_s2, 256 }
 0x109   :  { %p237_p7 = scmp.ne.s32.totalorder %s323_s2, %s236_s10  ;;  %p240_p8 = scmp.lt.u32.totalorder %s236_s10, %s323_s2 }
 0x10b   :  { %p242_p9 = pnand %p240_p8, %p237_p7 }
 0x10d   :  { %245 = shalt.err (!%p242_p9)
}
 0x10e   :  { %141 = dma.vmem_to_hbm [thread:$0]  %s136_s6, 256, %s323_s2, [#allocation4], %s253_s19, %s253_s19, %s254_s20  }
 0x10f   :  { %250 = dma.done.wait [#allocation4], 256  }
 0x110   :  { %251 = vsyncadd [#allocation4], 4294967040 }
 0x111   :  { %145 = vsyncpa [#allocation3], 1 }
 0x112   :  { %146 = vsyncpa [#allocation6], 1 }
 0x113   :  { %147 = vsyncpa [#allocation4], 1 }

</bundles_post_ra>
